<compile_context>
chip_gen: v5e
topology: v5e:2x2
jax: 0.10.0
libtpu: 0.0.40
codegen_flags: <defaults>
</compile_context>

<pallas_src>
import functools
import numpy as np

import jax
import jax.numpy as jnp
from jax import lax
import jax.scipy.linalg as jsl
from jax.experimental import pallas as pl
from jax.experimental.pallas import tpu as pltpu


def _round_up(x, m):
    return ((x + m - 1) // m) * m


# --------------------------------------------------------------------------
# Pallas kernel: c0 = x0 @ x0.T, ct = x1 @ x0.T, accumulated over time tiles
# --------------------------------------------------------------------------
def _gram_kernel(x0_ref, x1_ref, c0_ref, ct_ref, c0_acc, ct_acc):
    @pl.when(pl.program_id(0) == 0)
    def _init():
        c0_acc[...] = jnp.zeros_like(c0_acc)
        ct_acc[...] = jnp.zeros_like(ct_acc)

    x0 = x0_ref[...]
    x1 = x1_ref[...]
    # Contract the lane (time) axis of BOTH operands -> A @ B.T on the MXU
    # without materializing a transpose (no XLU work, no extra VMEM copy).
    dims = (((1,), (1,)), ((), ()))
    c0_acc[...] += lax.dot_general(x0, x0, dims,
                                   preferred_element_type=jnp.float32)
    ct_acc[...] += lax.dot_general(x1, x0, dims,
                                   preferred_element_type=jnp.float32)

    @pl.when(pl.program_id(0) == pl.num_programs(0) - 1)
    def _writeback():
        c0_ref[...] = c0_acc[...]
        ct_ref[...] = ct_acc[...]


@functools.partial(jax.jit, static_argnames=("max_tile_t", "compute_dtype"))
def gram_pallas(x0, x1, *, max_tile_t=2048, compute_dtype=jnp.float32):
    """Returns (c0, ct) = (x0 @ x0.T, x1 @ x0.T) as float32 (K, K) matrices."""
    k, t = x0.shape
    assert x1.shape == (k, t)

    kp = _round_up(max(k, 8), 8)                               # sublane multiple
    tile_t = min(_round_up(t, 128), _round_up(max_tile_t, 128))  # lane multiple
    tp = _round_up(t, tile_t)

    # Zero-padding the time axis does not change the Gram products; padding K
    # only adds zero rows/cols that are sliced off below.
    x0p = jnp.pad(x0.astype(compute_dtype), ((0, kp - k), (0, tp - t)))
    x1p = jnp.pad(x1.astype(compute_dtype), ((0, kp - k), (0, tp - t)))

    grid = (tp // tile_t,)
    in_spec = pl.BlockSpec((kp, tile_t), lambda i: (0, i))
    out_spec = pl.BlockSpec((kp, kp), lambda i: (0, 0))

    c0p, ctp = pl.pallas_call(
        _gram_kernel,
        out_shape=(jax.ShapeDtypeStruct((kp, kp), jnp.float32),
                   jax.ShapeDtypeStruct((kp, kp), jnp.float32)),
        grid_spec=pltpu.PrefetchScalarGridSpec(
            num_scalar_prefetch=0,
            grid=grid,
            in_specs=[in_spec, in_spec],
            out_specs=(out_spec, out_spec),
            scratch_shapes=[pltpu.VMEM((kp, kp), jnp.float32),
                            pltpu.VMEM((kp, kp), jnp.float32)]),
        compiler_params=pltpu.CompilerParams(
            dimension_semantics=("arbitrary",)),
    )(x0p, x1p)

    return c0p[:k, :k], ctp[:k, :k]


# --------------------------------------------------------------------------
# LIMG_PC module (JAX / Pallas version)
# --------------------------------------------------------------------------
class LIMG_PC_Pallas:
    def __init__(self, num_nodes, max_num_edges, dim, static_feat,
                 alpha1=0.1, alpha2=2.0, self_loops=True, num_eofs=100,
                 gram_compute_dtype=jnp.float32):
        if static_feat is None:
            raise ValueError(
                "Please give static node features (e.g. part of the timeseries)")
        self.num_nodes = num_nodes
        sf = jnp.asarray(static_feat, dtype=jnp.float32)        # (N, T)

        # --- __init__ SVD / EOF setup (plain-JAX glue, mirrors the PyTorch) ---
        # torch.linalg.svd and jnp.linalg.svd both return (U, S, Vh).
        A, Lh, E = jnp.linalg.svd(sf.T, full_matrices=True)     # A:(T,T) Lh:(m,) E:(N,N)
        A = A[:, :Lh.shape[0]]
        PCs = A * Lh                                             # (T, m)

        self.select_neofs = num_eofs
        eofs = E[:self.select_neofs, :]                          # (K, N)
        n = jnp.var(eofs, axis=1, ddof=1)                        # torch.var is unbiased
        self.eofs = eofs / n[:, None]

        PCS = PCs[:, :self.select_neofs]                         # (T, K)
        PCS = PCS * n[:, None].T * Lh[:self.select_neofs]
        self.PCS = PCS
        self.eig_vals = Lh
        self.var_explained = Lh * Lh / jnp.sum(Lh * Lh)

        tau0_data = PCS[:, :self.select_neofs].T                 # (K, T)
        tlag = 1
        self.tlag = tlag
        # TODO(synk): PyTorch keeps x0/x1 in float64; TPU path is float32, so the
        #             (K,K) solve inherits cond(x0)^2 sensitivity in f32.
        self.static_feat = tau0_data[:, 0:-tlag].astype(jnp.float32)   # x0 (K, T-1)
        self.static_feat1 = tau0_data[:, tlag:].astype(jnp.float32)    # x1 (K, T-1)

        self.dim = dim
        self.alpha1 = alpha1
        self.alpha2 = alpha2
        self.num_edges = max_num_edges
        self.self_loops = self_loops
        self.diag = jnp.eye(self.num_nodes, dtype=bool)
        self.gram_compute_dtype = gram_compute_dtype             # bf16 opt-in for v6e/v7x

    # ------------------------------------------------------------------
    def _solve(self, c0, ct):
        """adj = ct @ inv(c0): Cholesky solve for full-rank c0, pinv fallback."""
        k, t = self.static_feat.shape
        if t >= k:
            # c0 = x0 @ x0.T is SPD for full-rank x0; Cholesky == pinv result
            # at a fraction of the SVD-based pinv cost.
            cho = jsl.cho_factor(c0)
            return jsl.cho_solve(cho, ct.T).T
        # Rank-deficient Gram (fewer time samples than EOFs): need a true pinv.
        return ct @ jnp.linalg.pinv(c0)

    def forward(self, force_pallas=False):
        x0 = self.static_feat     # nodevec1 == nodevec11
        x1 = self.static_feat1    # nodevec21
        k, t = x0.shape
        if (not force_pallas) and (k * t) < (1 << 15):
            # Small-problem fallback: pallas_call dispatch overhead would
            # dominate; let XLA fuse the trivial expression.
            c0 = x0 @ x0.T
            ct = x1 @ x0.T
        else:
            c0, ct = gram_pallas(x0, x1,
                                 compute_dtype=self.gram_compute_dtype)
        # Tiny (K, K) solve + matmul: plain JAX (no second pallas_call).
        return self._solve(c0.astype(jnp.float32), ct.astype(jnp.float32))


# --------------------------------------------------------------------------
# Demo / correctness check
# --------------------------------------------------------------------------
if __name__ == "__main__":
    key = jax.random.PRNGKey(0)
    num_nodes = 16     # spatial locations
    T = 33             # time samples -> lagged series length 32
    num_eofs = 8       # K (adjacency is K x K)

    static_feat = np.asarray(
        jax.random.normal(key, (num_nodes, T), dtype=jnp.float32))

    model = LIMG_PC_Pallas(num_nodes=num_nodes,
                           max_num_edges=num_nodes * num_nodes,
                           dim=32, static_feat=static_feat, num_eofs=num_eofs)

    # 1) run the Pallas path once and block on it
    adj = model.forward(force_pallas=True)
    adj = jax.block_until_ready(adj)
    assert adj.shape == (num_eofs, num_eofs)

    # 2) Pallas Gram products match plain jnp matmuls tightly
    x0, x1 = model.static_feat, model.static_feat1
    c0_p, ct_p = gram_pallas(x0, x1)
    np.testing.assert_allclose(np.asarray(c0_p), np.asarray(x0 @ x0.T),
                               rtol=1e-5, atol=1e-4)
    np.testing.assert_allclose(np.asarray(ct_p), np.asarray(x1 @ x0.T),
                               rtol=1e-5, atol=1e-4)

    # 3) full forward matches the torch-semantics reference
    #    adj_ref = x1 @ x0.T @ pinv(x0 @ x0.T)
    adj_ref = x1 @ x0.T @ jnp.linalg.pinv(x0 @ x0.T)
    np.testing.assert_allclose(np.asarray(adj), np.asarray(adj_ref),
                               rtol=5e-3, atol=1e-4)

    # 4) small-problem (non-Pallas) fallback path agrees with the Pallas path
    adj_small = jax.block_until_ready(model.forward())
    np.testing.assert_allclose(np.asarray(adj_small), np.asarray(adj),
                               rtol=1e-4, atol=1e-4)

    print("KERNEL_OK")
</pallas_src>

<mosaic_0001>
module attributes {stable_mosaic.version = 11 : i64} {
  func.func @_gram_kernel(%arg0: i32, %arg1: memref<8x128xf32, #tpu.memory_space<vmem>>, %arg2: memref<8x128xf32, #tpu.memory_space<vmem>>, %arg3: memref<8x8xf32, #tpu.memory_space<vmem>>, %arg4: memref<8x8xf32, #tpu.memory_space<vmem>>, %arg5: memref<8x8xf32, #tpu.memory_space<vmem>>, %arg6: memref<8x8xf32, #tpu.memory_space<vmem>>) attributes {dimension_semantics = [#tpu.dimension_semantics<arbitrary>], iteration_bounds = array<i64: 1>, scalar_prefetch = 0 : i64, scratch_operands = 2 : i64, tpu.core_type = #tpu.core_type<tc>, window_params = [{transform_indices = @transform_0, window_bounds = array<i64: 8, 128>}, {transform_indices = @transform_1, window_bounds = array<i64: 8, 128>}, {pipeline_mode = #tpu.pipeline_mode<synchronous>, transform_indices = @transform_2, window_bounds = array<i64: 8, 8>}, {pipeline_mode = #tpu.pipeline_mode<synchronous>, transform_indices = @transform_3, window_bounds = array<i64: 8, 8>}]} {
    %c0_i32 = arith.constant 0 : i32
    %0 = arith.cmpi eq, %arg0, %c0_i32 : i32
    %1 = arith.extui %0 : i1 to i32
    %c0_i32_0 = arith.constant 0 : i32
    %2 = arith.cmpi ne, %1, %c0_i32_0 : i32
    scf.if %2 {
      %cst_15 = arith.constant 0.000000e+00 : f32
      %16 = vector.broadcast %cst_15 : f32 to vector<8x8xf32>
      %c0_16 = arith.constant 0 : index
      %c0_17 = arith.constant 0 : index
      %17 = vector.load %arg5[%c0_16, %c0_17] : memref<8x8xf32, #tpu.memory_space<vmem>>, vector<8x8xf32>
      tpu.vector_store %arg5[%c0_16, %c0_17], %16 {strides = array<i32>} : memref<8x8xf32, #tpu.memory_space<vmem>>, vector<8x8xf32>,
      %cst_18 = arith.constant 0.000000e+00 : f32
      %18 = vector.broadcast %cst_18 : f32 to vector<8x8xf32>
      %c0_19 = arith.constant 0 : index
      %c0_20 = arith.constant 0 : index
      %19 = vector.load %arg6[%c0_19, %c0_20] : memref<8x8xf32, #tpu.memory_space<vmem>>, vector<8x8xf32>
      tpu.vector_store %arg6[%c0_19, %c0_20], %18 {strides = array<i32>} : memref<8x8xf32, #tpu.memory_space<vmem>>, vector<8x8xf32>,
    } else {
    }
    %c0 = arith.constant 0 : index
    %c0_1 = arith.constant 0 : index
    %3 = vector.load %arg1[%c0, %c0_1] : memref<8x128xf32, #tpu.memory_space<vmem>>, vector<8x128xf32>
    %c0_2 = arith.constant 0 : index
    %c0_3 = arith.constant 0 : index
    %4 = vector.load %arg2[%c0_2, %c0_3] : memref<8x128xf32, #tpu.memory_space<vmem>>, vector<8x128xf32>
    %c0_4 = arith.constant 0 : index
    %c0_5 = arith.constant 0 : index
    %5 = vector.load %arg5[%c0_4, %c0_5] : memref<8x8xf32, #tpu.memory_space<vmem>>, vector<8x8xf32>
    %cst = arith.constant dense<0.000000e+00> : vector<8x8xf32>
    %6 = tpu.matmul %3, %3, %cst {dimension_numbers = #tpu.dot_dimension_numbers<[1], [1], [0], [0], [0, 0, 1, 0], [], []>} : vector<8x128xf32>, vector<8x128xf32>, vector<8x8xf32> -> vector<8x8xf32>
    %7 = arith.addf %5, %6 : vector<8x8xf32>
    %c0_6 = arith.constant 0 : index
    %c0_7 = arith.constant 0 : index
    %8 = vector.load %arg5[%c0_6, %c0_7] : memref<8x8xf32, #tpu.memory_space<vmem>>, vector<8x8xf32>
    tpu.vector_store %arg5[%c0_6, %c0_7], %7 {strides = array<i32>} : memref<8x8xf32, #tpu.memory_space<vmem>>, vector<8x8xf32>,
    %c0_8 = arith.constant 0 : index
    %c0_9 = arith.constant 0 : index
    %9 = vector.load %arg6[%c0_8, %c0_9] : memref<8x8xf32, #tpu.memory_space<vmem>>, vector<8x8xf32>
    %cst_10 = arith.constant dense<0.000000e+00> : vector<8x8xf32>
    %10 = tpu.matmul %4, %3, %cst_10 {dimension_numbers = #tpu.dot_dimension_numbers<[1], [1], [0], [0], [0, 0, 1, 0], [], []>} : vector<8x128xf32>, vector<8x128xf32>, vector<8x8xf32> -> vector<8x8xf32>
    %11 = arith.addf %9, %10 : vector<8x8xf32>
    %c0_11 = arith.constant 0 : index
    %c0_12 = arith.constant 0 : index
    %12 = vector.load %arg6[%c0_11, %c0_12] : memref<8x8xf32, #tpu.memory_space<vmem>>, vector<8x8xf32>
    tpu.vector_store %arg6[%c0_11, %c0_12], %11 {strides = array<i32>} : memref<8x8xf32, #tpu.memory_space<vmem>>, vector<8x8xf32>,
    %c0_i32_13 = arith.constant 0 : i32
    %13 = arith.cmpi eq, %arg0, %c0_i32_13 : i32
    %14 = arith.extui %13 : i1 to i32
    %c0_i32_14 = arith.constant 0 : i32
    %15 = arith.cmpi ne, %14, %c0_i32_14 : i32
    scf.if %15 {
      %c0_15 = arith.constant 0 : index
      %c0_16 = arith.constant 0 : index
      %16 = vector.load %arg5[%c0_15, %c0_16] : memref<8x8xf32, #tpu.memory_space<vmem>>, vector<8x8xf32>
      %c0_17 = arith.constant 0 : index
      %c0_18 = arith.constant 0 : index
      %17 = vector.load %arg3[%c0_17, %c0_18] : memref<8x8xf32, #tpu.memory_space<vmem>>, vector<8x8xf32>
      tpu.vector_store %arg3[%c0_17, %c0_18], %16 {strides = array<i32>} : memref<8x8xf32, #tpu.memory_space<vmem>>, vector<8x8xf32>,
      %c0_19 = arith.constant 0 : index
      %c0_20 = arith.constant 0 : index
      %18 = vector.load %arg6[%c0_19, %c0_20] : memref<8x8xf32, #tpu.memory_space<vmem>>, vector<8x8xf32>
      %c0_21 = arith.constant 0 : index
      %c0_22 = arith.constant 0 : index
      %19 = vector.load %arg4[%c0_21, %c0_22] : memref<8x8xf32, #tpu.memory_space<vmem>>, vector<8x8xf32>
      tpu.vector_store %arg4[%c0_21, %c0_22], %18 {strides = array<i32>} : memref<8x8xf32, #tpu.memory_space<vmem>>, vector<8x8xf32>,
    } else {
    }
    return
  }
  func.func @transform_0(%arg0: i32) -> (i32, i32) {
    %c0_i32 = arith.constant 0 : i32
    %c0_i32_0 = arith.constant 0 : i32
    return %c0_i32, %arg0 : i32, i32
  }
  func.func @transform_1(%arg0: i32) -> (i32, i32) {
    %c0_i32 = arith.constant 0 : i32
    %c0_i32_0 = arith.constant 0 : i32
    return %c0_i32, %arg0 : i32, i32
  }
  func.func @transform_2(%arg0: i32) -> (i32, i32) {
    %c0_i32 = arith.constant 0 : i32
    %c0_i32_0 = arith.constant 0 : i32
    %c0_i32_1 = arith.constant 0 : i32
    return %c0_i32, %c0_i32_0 : i32, i32
  }
  func.func @transform_3(%arg0: i32) -> (i32, i32) {
    %c0_i32 = arith.constant 0 : i32
    %c0_i32_0 = arith.constant 0 : i32
    %c0_i32_1 = arith.constant 0 : i32
    return %c0_i32, %c0_i32_0 : i32, i32
  }
}

</mosaic_0001>

<bundles_post_ra>
// kernel: gram_pallas.1
= control target key start
LH: loop header
LB: loop body
LE: loop exit
PB: predicated region body
PF: predicated region fallthrough
CT: control target
= control target key end

     0   :  { %9 = vsyncpa [#allocation5], 0  ;;  %vm19_vm0 = vcmask 64512   ;;  %s206_s0 = inlined_call_operand.vmem [shape: f32[8,128], index: 0, kind: input, shape index: {}]   ;;  %s207_s1 = inlined_call_operand.vmem [shape: f32[8,128], index: 1, kind: input, shape index: {}]   ;;  %s208_s2 = inlined_call_operand.hbm [shape: f32[8,8], index: 2, kind: output, shape index: {0}]   ;;  %s209_s3 = inlined_call_operand.hbm [shape: f32[8,8], index: 3, kind: output, shape index: {1}]  }
   0x1   :  { %v22_v0 = vld [vmem:[%s206_s0] sm:$0xff] }
   0x2   :  { %10 = vsyncpa [#allocation7], 0  ;;  %40 = vmatpush.xpose.msra.mxu0 %v22_v0  ;;  %64 = vmatpush.xpose.msra.mxu1 %v22_v0  ;;  %v23_v1 = vld [vmem:[%s207_s1] sm:$0xff]  ;;  %v165_v2 = vmov 0.0   ;;  %s166_s0 = smov [#allocation4]   ;;  %s85_s18 = sshll.u32 %s208_s2, 4  ;;  %s86_s18 = int_to_ptr.hbm [resolvable:$true] %s85_s18 }
   0x3   :  { %20 = vst.msk [vmem:[#allocation2] sm:$0xff] %vm19_vm0, %v165_v2  ;;  %s83_s16 = sshll.u32 %s166_s0, 4  ;;  %s167_s19 = smov [#allocation6]   ;;  %s84_s16 = int_to_ptr.vmem [resolvable:$true] %s83_s16 }
   0x4   :  { %21 = vst.msk [vmem:[#allocation3] sm:$0xff] %vm19_vm0, %v165_v2  ;;  %s94_s20 = sshll.u32 %s167_s19, 4  ;;  %s96_s23 = sshll.u32 %s209_s3, 4  ;;  %s95_s20 = int_to_ptr.vmem [resolvable:$true] %s94_s20  ;;  %s97_s23 = int_to_ptr.hbm [resolvable:$true] %s96_s23 }
   0x5   :  { %41 = vmatmul.f32.vlgmr.msra.gmra.mxu0 %v22_v0  ;;  %65 = vmatmul.f32.vlgmr.msra.gmra.mxu1 %v23_v1 }
   0xa   :  { %v24_v3 = vld [vmem:[#allocation2] sm:$0xff] }
   0xb   :  { %v48_v4 = vld [vmem:[#allocation3] sm:$0xff] }
  0x82   :  { %v42_v5 = vpop.f32.mrf.mxu0  ;;  %v66_v6 = vpop.f32.mrf.mxu1 }
  0x83   :  { %v45_v7 = vadd.f32 %v42_v5, %v24_v3  ;;  %v69_v8 = vadd.f32 %v66_v6, %v48_v4 }
  0x85   :  { %47 = vst.msk [vmem:[#allocation2] sm:$0xff] %vm19_vm0, %v45_v7 }
  0x86   :  { %70 = vst.msk [vmem:[#allocation3] sm:$0xff] %vm19_vm0, %v69_v8 }
  0x8c   :  { %v74_v9 = vld [vmem:[#allocation2] sm:$0xff] }
  0x8d   :  { %75 = vst.msk [vmem:[#allocation4] sm:$0xff] %vm19_vm0, %v74_v9  ;;  %v76_v10 = vld [vmem:[#allocation3] sm:$0xff] }
  0x8e   :  { %88 = dma.vmem_to_hbm [thread:$0]  %s84_s16, 128, %s86_s18, [#allocation5]   ;;  %77 = vst.msk [vmem:[#allocation6] sm:$0xff] %vm19_vm0, %v76_v10 }
  0x8f   :  { %99 = dma.vmem_to_hbm [thread:$0]  %s95_s20, 128, %s97_s23, [#allocation7]  }
  0x90   :  { %161 = dma.done.wait [#allocation5], 128  }
  0x91   :  { %162 = vsyncadd [#allocation5], 4294967168 }
  0x92   :  { %163 = dma.done.wait [#allocation7], 128  }
  0x93   :  { %164 = vsyncadd [#allocation7], 4294967168 }
  0x94   :  { %108 = vsyncpa [#allocation5], 1 }
  0x95   :  { %109 = vsyncpa [#allocation7], 1 }

</bundles_post_ra>
